<compile_context>
chip_gen: v7x
topology: tpu7x:2x2x1
jax: 0.10.0
libtpu: 0.0.40
codegen_flags: <defaults>
</compile_context>

<pallas_src>
import jax
import jax.numpy as jnp
from jax.experimental import pallas as pl
from jax.experimental.pallas import tpu as pltpu


def _round_up(x, m):
    return (x + m - 1) // m * m


def _contrast_kernel(mb_ref, x_ref, o_ref):
    # mb_ref: (TB, 2) f32 per-row [m, b]; x_ref / o_ref: (TB, TN) pixel tiles.
    mb = mb_ref[...]
    m = jnp.maximum(mb[:, 0:1], 0.0)           # Kornia clamp(min=0); (TB, 1)
    b = mb[:, 1:2]                             # (TB, 1)
    x = x_ref[...].astype(jnp.float32)
    # Kornia AdjustContrast: multiply by contrast factor, clip to [0, 1].
    adj = jnp.clip(x * m, 0.0, 1.0)            # (TB,1) lane-broadcast over (TB,TN)
    o_ref[...] = (b * adj + (1.0 - b) * x).astype(o_ref.dtype)


def dcontrast_forward(x_nchw, m, blend):
    """x_nchw: (B, C, H, W); m, blend: (B,) floats. Returns (B, C, H, W)."""
    B = x_nchw.shape[0]
    N = 1
    for d in x_nchw.shape[1:]:
        N *= d
    dtype = x_nchw.dtype
    itemsize = jnp.dtype(dtype).itemsize

    # ---- tiling ----------------------------------------------------------------------
    # Sublane packing multiple per element width (f32: 8, bf16: 16, int8/fp8: 32).
    sub = {4: 8, 2: 16, 1: 32}.get(itemsize, 8)
    if B % sub == 0:
        TB = min(B, 8 * sub)                   # sublane-aligned batch tile
    else:
        TB = B                                 # full-extent block: exempt from the rule

    # ~2 MiB per x tile: with double-buffered input + output the live footprint is
    # ~4x tile ~= 8 MiB, inside every generation's scoped-VMEM default (16/32/32 MiB).
    TILE_BUDGET = 2 * 1024 * 1024
    if N <= 128:
        TN = N                                 # full extent, exempt from 128-multiple rule
    else:
        n_pad = _round_up(N, 128)
        TN = max(128, min(n_pad, (TILE_BUDGET // (TB * itemsize)) // 128 * 128))

    x_flat = x_nchw.reshape(B, N)              # contiguous reshape: no HBM copy
    mb = jnp.stack(
        [m.astype(jnp.float32), blend.astype(jnp.float32)], axis=1)   # (B, 2)

    grid = (pl.cdiv(B, TB), pl.cdiv(N, TN))    # ragged last blocks handled by Pallas

    out_flat = pl.pallas_call(
        _contrast_kernel,
        out_shape=jax.ShapeDtypeStruct((B, N), dtype),
        grid_spec=pltpu.PrefetchScalarGridSpec(
            num_scalar_prefetch=0,
            grid=grid,
            in_specs=[
                pl.BlockSpec((TB, 2), lambda i, j: (i, 0)),    # fused [m, b] column pair
                pl.BlockSpec((TB, TN), lambda i, j: (i, j)),   # x
            ],
            out_specs=pl.BlockSpec((TB, TN), lambda i, j: (i, j)),
        ),
        compiler_params=pltpu.CompilerParams(
            dimension_semantics=("parallel", "parallel")),
    )(mb, x_flat)

    return out_flat.reshape(x_nchw.shape)


def _reference(x, m, blend):
    mf = jnp.maximum(m, 0.0)[:, None, None, None]
    adj = jnp.clip(x.astype(jnp.float32) * mf, 0.0, 1.0)
    b = blend[:, None, None, None]
    return (b * adj + (1.0 - b) * x.astype(jnp.float32)).astype(x.dtype)


if __name__ == "__main__":
    key = jax.random.PRNGKey(0)
    k_x, k_m, k_b, k_x2 = jax.random.split(key, 4)

    # Deterministic "parameter init" + sampling (module __init__ defaults reconstructed).
    low_m, high_m = 0.5, 1.5
    app_prob = 0.7

    def sample_params(km, kb, batch):
        m_raw = jax.random.uniform(km, (batch,), minval=low_m, maxval=high_m,
                                   dtype=jnp.float32)
        b_soft = jax.nn.sigmoid(
            (jnp.log(app_prob / (1.0 - app_prob))
             + jax.random.logistic(kb, (batch,), dtype=jnp.float32)) / 0.5)
        b_hard = (b_soft > 0.5).astype(jnp.float32)   # straight-through forward value
        return m_raw, b_hard

    # Case 1: small, 128-aligned pixel count (B=2, C=4, H=W=16 -> N=1024).
    B, C, H, W = 2, 4, 16, 16
    x = jax.random.uniform(k_x, (B, C, H, W), dtype=jnp.float32)
    m, b_hard = sample_params(k_m, k_b, B)
    out = dcontrast_forward(x, m, b_hard)
    jax.block_until_ready(out)
    assert out.shape == (B, C, H, W)
    assert jnp.allclose(out, _reference(x, m, b_hard), atol=1e-6), "mismatch (aligned)"

    # Case 2: non-128-aligned pixel count + non-multiple-of-8 batch (ragged-block path).
    B2, C2, H2, W2 = 3, 3, 9, 11
    x2 = jax.random.uniform(k_x2, (B2, C2, H2, W2), dtype=jnp.float32)
    m2_, b2_ = sample_params(k_b, k_m, B2)
    out2 = dcontrast_forward(x2, m2_, b2_)
    jax.block_until_ready(out2)
    assert out2.shape == (B2, C2, H2, W2)
    assert jnp.allclose(out2, _reference(x2, m2_, b2_), atol=1e-6), "mismatch (ragged)"

    print("KERNEL_OK")
</pallas_src>

<mosaic_0001>
module attributes {stable_mosaic.version = 11 : i64} {
  func.func @_contrast_kernel(%arg0: i32, %arg1: i32, %arg2: memref<2x2xf32, #tpu.memory_space<vmem>>, %arg3: memref<2x1024xf32, #tpu.memory_space<vmem>>, %arg4: memref<2x1024xf32, #tpu.memory_space<vmem>>) attributes {dimension_semantics = [#tpu.dimension_semantics<parallel>, #tpu.dimension_semantics<parallel>], iteration_bounds = array<i64: 1, 1>, scalar_prefetch = 0 : i64, scratch_operands = 0 : i64, tpu.core_type = #tpu.core_type<tc>, window_params = [{transform_indices = @transform_0, window_bounds = array<i64: 2, 2>}, {transform_indices = @transform_1, window_bounds = array<i64: 2, 1024>}, {transform_indices = @transform_2, window_bounds = array<i64: 2, 1024>}]} {
    %c0 = arith.constant 0 : index
    %c0_0 = arith.constant 0 : index
    %0 = vector.load %arg2[%c0, %c0_0] : memref<2x2xf32, #tpu.memory_space<vmem>>, vector<2x2xf32>
    %1 = vector.extract_strided_slice %0 {offsets = [0, 0], sizes = [2, 1], strides = [1, 1]} : vector<2x2xf32> to vector<2x1xf32>
    %cst = arith.constant 0.000000e+00 : f32
    %2 = vector.broadcast %cst : f32 to vector<2x1xf32>
    %3 = arith.maximumf %1, %2 : vector<2x1xf32>
    %4 = vector.extract_strided_slice %0 {offsets = [0, 1], sizes = [2, 1], strides = [1, 1]} : vector<2x2xf32> to vector<2x1xf32>
    %c0_1 = arith.constant 0 : index
    %c0_2 = arith.constant 0 : index
    %5 = vector.load %arg3[%c0_1, %c0_2] : memref<2x1024xf32, #tpu.memory_space<vmem>>, vector<2x1024xf32>
    %6 = vector.broadcast %3 : vector<2x1xf32> to vector<2x1024xf32>
    %7 = arith.mulf %5, %6 : vector<2x1024xf32>
    %cst_3 = arith.constant 0.000000e+00 : f32
    %cst_4 = arith.constant 1.000000e+00 : f32
    %8 = vector.broadcast %cst_3 : f32 to vector<2x1024xf32>
    %9 = arith.maximumf %8, %7 : vector<2x1024xf32>
    %10 = vector.broadcast %cst_4 : f32 to vector<2x1024xf32>
    %11 = arith.minimumf %10, %9 : vector<2x1024xf32>
    %12 = vector.broadcast %4 : vector<2x1xf32> to vector<2x1024xf32>
    %13 = arith.mulf %12, %11 : vector<2x1024xf32>
    %cst_5 = arith.constant 1.000000e+00 : f32
    %14 = vector.broadcast %cst_5 : f32 to vector<2x1xf32>
    %15 = arith.subf %14, %4 : vector<2x1xf32>
    %16 = vector.broadcast %15 : vector<2x1xf32> to vector<2x1024xf32>
    %17 = arith.mulf %16, %5 : vector<2x1024xf32>
    %18 = arith.addf %13, %17 : vector<2x1024xf32>
    %c0_6 = arith.constant 0 : index
    %c0_7 = arith.constant 0 : index
    %19 = vector.load %arg4[%c0_6, %c0_7] : memref<2x1024xf32, #tpu.memory_space<vmem>>, vector<2x1024xf32>
    tpu.vector_store %arg4[%c0_6, %c0_7], %18 {strides = array<i32>} : memref<2x1024xf32, #tpu.memory_space<vmem>>, vector<2x1024xf32>,
    return
  }
  func.func @transform_0(%arg0: i32, %arg1: i32) -> (i32, i32) {
    %c0_i32 = arith.constant 0 : i32
    %c0_i32_0 = arith.constant 0 : i32
    return %arg0, %c0_i32 : i32, i32
  }
  func.func @transform_1(%arg0: i32, %arg1: i32) -> (i32, i32) {
    %c0_i32 = arith.constant 0 : i32
    return %arg0, %arg1 : i32, i32
  }
  func.func @transform_2(%arg0: i32, %arg1: i32) -> (i32, i32) {
    %c0_i32 = arith.constant 0 : i32
    return %arg0, %arg1 : i32, i32
  }
}

</mosaic_0001>

<bundles_post_ra>
// kernel: tpu_custom_call.1
= control target key start
LH: loop header
LB: loop body
LE: loop exit
PB: predicated region body
PF: predicated region fallthrough
CT: control target
= control target key end

     0   :  { %7 = vsyncpa [#allocation3], 0  ;;  %s399_s0 = inlined_call_operand.hbm [shape: f32[2,2], index: 0, kind: input, shape index: {}]   ;;  %s400_s1 = inlined_call_operand.hbm [shape: f32[2,1024], index: 1, kind: input, shape index: {}]   ;;  %s401_s2 = inlined_call_operand.hbm [shape: f32[2,1024], index: 2, kind: output, shape index: {}]  }
   0x1   :  { %8 = vsyncpa [#allocation6], 0 }
   0x2   :  { %9 = vsyncpa [#allocation4], 0  ;;  %s327_s9 = smov [#allocation2]   ;;  %s328_s11 = smov [#allocation5]  }
   0x3   :  { %s16_s10 = sshll.u32 %s327_s9, 4  ;;  %s26_s12 = sshll.u32 %s328_s11, 4  ;;  %s17_s10 = int_to_ptr.vmem [resolvable:$true] %s16_s10  ;;  %s27_s12 = int_to_ptr.vmem [resolvable:$true] %s26_s12 }
   0x4   :  { %s255_s15 = scalar_lea.hbm %s399_s0, 32 }
   0x5   :  { %p256_p0 = scmp.ne.s32.totalorder %s399_s0, %s255_s15  ;;  %p259_p1 = scmp.lt.u32.totalorder %s255_s15, %s399_s0 }
   0x7   :  { %p261_p2 = pnand %p259_p1, %p256_p0 }
   0x9   :  { %264 = shalt.err (!%p261_p2)
}
   0xa   :  { %s265_s20 = scalar_lea.vmem %s17_s10, 32  ;;  %p270_p4 = scmp.lt.s32.totalorder %s17_s10, %s17_s10 }
   0xb   :  { %p266_p3 = scmp.ne.s32.totalorder %s17_s10, %s265_s20  ;;  %p271_p5 = scmp.lt.s32.totalorder %s265_s20, %s265_s20 }
   0xd   :  { %p272_p6 = por %p271_p5, %p270_p4 }
   0xf   :  { %p273_p7 = pnand %p272_p6, %p266_p3 }
  0x11   :  { %276 = shalt.err (!%p273_p7)
}
  0x12   :  { %19 = dma.hbm_to_vmem [thread:$0]  %s399_s0, 32, %s17_s10, [#allocation3]  }
  0x13   :  { %s277_s25 = scalar_lea.hbm %s400_s1, 256 }
  0x14   :  { %p278_p8 = scmp.ne.s32.totalorder %s400_s1, %s277_s25  ;;  %p281_p9 = scmp.lt.u32.totalorder %s277_s25, %s400_s1 }
  0x16   :  { %p283_p10 = pnand %p281_p9, %p278_p8 }
  0x18   :  { %286 = shalt.err (!%p283_p10)
}
  0x19   :  { %s287_s30 = scalar_lea.vmem %s27_s12, 256  ;;  %p292_p12 = scmp.lt.s32.totalorder %s27_s12, %s27_s12 }
  0x1a   :  { %p288_p11 = scmp.ne.s32.totalorder %s27_s12, %s287_s30  ;;  %p293_p13 = scmp.lt.s32.totalorder %s287_s30, %s287_s30 }
  0x1c   :  { %p294_p0 = por %p293_p13, %p292_p12 }
  0x1e   :  { %p295_p1 = pnand %p294_p0, %p288_p11 }
  0x20   :  { %298 = shalt.err (!%p295_p1)
}
  0x21   :  { %29 = dma.hbm_to_vmem [thread:$0]  %s400_s1, 256, %s27_s12, [#allocation6]  }
  0x22   :  { %321 = dma.done.wait [#allocation3], 32  }
  0x23   :  { %322 = vsyncadd [#allocation3], 4294967264 }
  0x24   :  { %323 = dma.done.wait [#allocation6], 256  }
  0x25   :  { %324 = vsyncadd [#allocation6], 4294967040  ;;  %v329_v0 = vmov 0   ;;  %v330_v1 = vmov 1   ;;  %v36_v2 = vld [vmem:[#allocation2] sm:$0x3]  ;;  %v47_v9 = vlaneseq }
  0x26   :  { %250 = vset.pattern.permute.xlu0 %v329_v0  ;;  %252 = vset.pattern.permute.xlu1 %v330_v1  ;;  %v37_v3 = vmax.f32 %v36_v2, 0.0  ;;  %v115_v4 = vsub.f32 1.0, %v36_v2  ;;  %v331_v5 = vmov 1983009808   ;;  %v332_v7 = vmov 269488144  }
  0x27   :  { %v67_v6 = vunpack.c.l.s4 %v331_v5  ;;  %v45_v8 = vunpack.c.l.s4 %v332_v7  ;;  %v48_v12 = vshrl.u32 %v47_v9, 7  ;;  %v38_v14 = vld [vmem:[#allocation5] sm:$0xff]  ;;  %v39_v17 = vld [vmem:[#allocation5 + $0x8] sm:$0xff]  ;;  %s333_s1 = smov [#allocation7]  }
  0x28   :  { %42 = vperm.xlu0 %250, %v37_v3   ;;  %118 = vperm.xlu1 %252, %v115_v4   ;;  %v123_v16 = vcombine.high %v38_v14, %v38_v14  ;;  %v140_v19 = vcombine.high %v39_v17, %v39_v17  ;;  %s233_s4 = sshll.u32 %s333_s1, 4  ;;  %s234_s4 = int_to_ptr.vmem [resolvable:$true] %s233_s4 }
  0x29   :  { %v68_v10 = vunpack.c.0.s8 %v67_v6  ;;  %v46_v11 = vunpack.c.0.s8 %v45_v8  ;;  %s299_s5 = scalar_lea.vmem %s234_s4, 256  ;;  %p304_p3 = scmp.lt.s32.totalorder %s234_s4, %s234_s4 }
  0x2a   :  { %p300_p2 = scmp.ne.s32.totalorder %s234_s4, %s299_s5  ;;  %p305_p4 = scmp.lt.s32.totalorder %s299_s5, %s299_s5 }
  0x2b   :  { %v373_v13 = vsub.s32 %v68_v10, %v48_v12  ;;  %v49_v15 = vsub.s32 %v46_v11, %v48_v12 }
  0x2c   :  { %251 = vset.pattern.permute.xlu0 %v330_v1  ;;  %p306_p5 = por %p305_p4, %p304_p3 }
  0x2d   :  { %60 = vperm.xlu0 %251, %v36_v2   ;;  %v130_v18 = vrot.slane %v38_v14, %v373_v13  ;;  %v137_v22 = vrot.slane %v123_v16, %v373_v13  ;;  %v147_v23 = vrot.slane %v39_v17, %v373_v13  ;;  %v154_v27 = vrot.slane %v140_v19, %v373_v13 }
  0x2e   :  { %p307_p6 = pnand %p306_p5, %p300_p2 }
  0x2f   :  { %v138_v26 = vcombine.high %v130_v18, %v130_v18  ;;  %v139_v31 = vcombine.high %v137_v22, %v137_v22  ;;  %v155_v32 = vcombine.high %v147_v23, %v147_v23  ;;  %v156_v35 = vcombine.high %v154_v27, %v154_v27 }
  0xa7   :  { %v43_v20 = vpop.permute.xlu0 %42  ;;  %v119_v30 = vpop.permute.xlu1 %118 }
  0xa8   :  { %v50_v21 = vrot.slane %v43_v20, %v49_v15  ;;  %v165_v36 = vmul.f32 %v130_v18, %v119_v30  ;;  %v166_v37 = vmul.f32 %v138_v26, %v119_v30  ;;  %v167_v43 = vmul.f32 %v137_v22, %v119_v30 }
  0xa9   :  { %v168_v44 = vmul.f32 %v139_v31, %v119_v30  ;;  %v169_v45 = vmul.f32 %v147_v23, %v119_v30  ;;  %v170_v46 = vmul.f32 %v155_v32, %v119_v30  ;;  %v171_v53 = vmul.f32 %v154_v27, %v119_v30 }
  0xaa   :  { %v52_v24 = vmul.f32 %v50_v21, %v38_v14  ;;  %v53_v25 = vmul.f32 %v50_v21, %v39_v17  ;;  %v172_v54 = vmul.f32 %v156_v35, %v119_v30 }
  0xac   :  { %v54_v28 = vmax.f32 %v52_v24, 0.0  ;;  %v55_v29 = vmax.f32 %v53_v25, 0.0  ;;  %v61_v42 = vpop.permute.xlu0 %60 }
  0xae   :  { %v56_v33 = vmin.f32 %v54_v28, 1.0  ;;  %v57_v34 = vmin.f32 %v55_v29, 1.0 }
  0xb0   :  { %v65_v38 = vcombine.high %v56_v33, %v56_v33  ;;  %v72_v39 = vrot.slane %v56_v33, %v373_v13  ;;  %v82_v40 = vcombine.high %v57_v34, %v57_v34  ;;  %v89_v41 = vrot.slane %v57_v34, %v373_v13 }
  0xb2   :  { %v79_v47 = vrot.slane %v65_v38, %v373_v13  ;;  %v80_v48 = vcombine.high %v72_v39, %v72_v39  ;;  %v96_v49 = vrot.slane %v82_v40, %v373_v13  ;;  %v97_v50 = vcombine.high %v89_v41, %v89_v41 }
  0xb3   :  { %v107_v51 = vmul.f32 %v72_v39, %v61_v42  ;;  %v111_v52 = vmul.f32 %v89_v41, %v61_v42 }
  0xb4   :  { %v81_v55 = vcombine.high %v79_v47, %v79_v47  ;;  %v98_v56 = vcombine.high %v96_v49, %v96_v49  ;;  %v108_v57 = vmul.f32 %v80_v48, %v61_v42  ;;  %v109_v58 = vmul.f32 %v79_v47, %v61_v42 }
  0xb5   :  { %v112_v59 = vmul.f32 %v97_v50, %v61_v42  ;;  %v113_v60 = vmul.f32 %v96_v49, %v61_v42  ;;  %v173_v63 = vadd.f32 %v165_v36, %v107_v51  ;;  %v177_v2 = vadd.f32 %v169_v45, %v111_v52 }
  0xb6   :  { %v110_v61 = vmul.f32 %v81_v55, %v61_v42  ;;  %v114_v62 = vmul.f32 %v98_v56, %v61_v42  ;;  %v174_v0 = vadd.f32 %v166_v37, %v108_v57  ;;  %v175_v1 = vadd.f32 %v167_v43, %v109_v58 }
  0xb7   :  { %v178_v3 = vadd.f32 %v170_v46, %v112_v59  ;;  %v179_v5 = vadd.f32 %v171_v53, %v113_v60 }
  0xb8   :  { %v176_v4 = vadd.f32 %v168_v44, %v110_v61  ;;  %v180_v6 = vadd.f32 %v172_v54, %v114_v62  ;;  %v189_v7 = vcombine.low %v173_v63, %v174_v0 }
  0xb9   :  { %v206_v8 = vcombine.low %v177_v2, %v178_v3 }
  0xba   :  { %v190_v9 = vcombine.low %v175_v1, %v176_v4  ;;  %v207_v10 = vcombine.low %v179_v5, %v180_v6  ;;  %v197_v11 = vrot.slane %v189_v7, %v373_v13 }
  0xbb   :  { %v214_v14 = vrot.slane %v206_v8, %v373_v13 }
  0xbc   :  { %v204_v12 = vrot.slane %v190_v9, %v373_v13  ;;  %v221_v15 = vrot.slane %v207_v10, %v373_v13 }
  0xbe   :  { %v205_v16 = vcombine.low %v197_v11, %v204_v12  ;;  %v222_v17 = vcombine.low %v214_v14, %v221_v15 }
  0xc0   :  { %225 = vst [vmem:[#allocation7] sm:$0xff] %v205_v16  ;;  %226 = vst [vmem:[#allocation7 + $0x8] sm:$0xff] %v222_v17 }
  0xc1   :  { %310 = shalt.err (!%p307_p6)
}
  0xc2   :  { %s311_s8 = scalar_lea.hbm %s401_s2, 256 }
  0xc3   :  { %p312_p7 = scmp.ne.s32.totalorder %s401_s2, %s311_s8  ;;  %p315_p8 = scmp.lt.u32.totalorder %s311_s8, %s401_s2 }
  0xc5   :  { %p317_p9 = pnand %p315_p8, %p312_p7 }
  0xc7   :  { %320 = shalt.err (!%p317_p9)
}
  0xc8   :  { %236 = dma.vmem_to_hbm [thread:$0]  %s234_s4, 256, %s401_s2, [#allocation4]  }
  0xc9   :  { %325 = dma.done.wait [#allocation4], 256  }
  0xca   :  { %326 = vsyncadd [#allocation4], 4294967040 }
  0xcb   :  { %240 = vsyncpa [#allocation3], 1 }
  0xcc   :  { %241 = vsyncpa [#allocation6], 1 }
  0xcd   :  { %242 = vsyncpa [#allocation4], 1 }

</bundles_post_ra>
